<compile_context>
chip_gen: v6e
topology: v6e:2x2x1
jax: 0.10.0
libtpu: 0.0.40
codegen_flags: <defaults>
</compile_context>

<pallas_src>
import functools

import jax
import jax.numpy as jnp
from jax.experimental import pallas as pl
from jax.experimental.pallas import tpu as pltpu  # noqa: F401  (TPU backend)


def _round_up(x, m):
    return (x + m - 1) // m * m


def mlp_kernel(x_ref, w1_ref, b1_ref, w2_ref, b2_ref, o_ref):
    # First linear: bf16 x bf16 -> f32 accumulation on the MXU.
    h = jnp.dot(x_ref[...], w1_ref[...], preferred_element_type=jnp.float32)
    # Bias (broadcast (1, H) -> (B, H)) + ReLU entirely in f32 on the VPU.
    h = jnp.maximum(h + b1_ref[...], 0.0)
    # Second linear: cast activations to bf16 so the MXU runs its native path.
    y = jnp.dot(h.astype(jnp.bfloat16), w2_ref[...],
                preferred_element_type=jnp.float32)
    o_ref[...] = (y + b2_ref[...]).astype(o_ref.dtype)


@functools.partial(jax.jit, static_argnames=())
def mlp_forward(x, w1, b1, w2, b2):
    """x: (B, 512) f32. Weights stored as (in, out) = PyTorch weight.T.
    b1: (256,), b2: (10,). Returns (B, 10) f32."""
    B, D_in = x.shape
    D_hid = w1.shape[1]
    D_out = w2.shape[1]

    # Lane/sublane alignment: B -> multiple of 8, output features -> multiple
    # of 128 (kills masked vst.msk stores and the N=10 "empty" matmul).
    B_pad = _round_up(max(B, 8), 8)
    N_pad = _round_up(D_out, 128)

    # bf16 operands for the matmuls (halves HBM->VMEM weight traffic).
    x_p = jnp.zeros((B_pad, D_in), jnp.bfloat16).at[:B, :].set(
        x.astype(jnp.bfloat16))
    w1_b = w1.astype(jnp.bfloat16)
    w2_p = jnp.zeros((D_hid, N_pad), jnp.bfloat16).at[:, :D_out].set(
        w2.astype(jnp.bfloat16))

    # Biases stay f32 as (1, N) rows; broadcast happens once inside the kernel.
    b1_r = b1.reshape(1, D_hid).astype(jnp.float32)
    b2_p = jnp.zeros((1, N_pad), jnp.float32).at[:, :D_out].set(
        b2.reshape(1, D_out).astype(jnp.float32))

    flops = 2 * B_pad * D_in * D_hid + 2 * B_pad * D_hid * N_pad
    bytes_accessed = (x_p.size * 2 + w1_b.size * 2 + w2_p.size * 2
                      + b1_r.size * 4 + b2_p.size * 4 + B_pad * N_pad * 4)

    out = pl.pallas_call(
        mlp_kernel,
        out_shape=jax.ShapeDtypeStruct((B_pad, N_pad), jnp.float32),
        in_specs=[
            pl.BlockSpec((B_pad, D_in), lambda: (0, 0)),
            pl.BlockSpec((D_in, D_hid), lambda: (0, 0)),
            pl.BlockSpec((1, D_hid), lambda: (0, 0)),
            pl.BlockSpec((D_hid, N_pad), lambda: (0, 0)),
            pl.BlockSpec((1, N_pad), lambda: (0, 0)),
        ],
        out_specs=pl.BlockSpec((B_pad, N_pad), lambda: (0, 0)),
        cost_estimate=pl.CostEstimate(
            flops=flops, transcendentals=0, bytes_accessed=bytes_accessed),
    )(x_p, w1_b, b1_r, w2_p, b2_p)

    # Strip batch / feature padding.
    return out[:B, :D_out]


def init_params(key):
    k1, k2, k3, k4 = jax.random.split(key, 4)
    # PyTorch nn.Linear default init: U(-1/sqrt(fan_in), 1/sqrt(fan_in)).
    bound1 = 1.0 / jnp.sqrt(512.0)
    bound2 = 1.0 / jnp.sqrt(256.0)
    # Stored as (in, out): transpose of PyTorch's (out, in) weight.
    w1 = jax.random.uniform(k1, (512, 256), jnp.float32, -bound1, bound1)
    b1 = jax.random.uniform(k2, (256,), jnp.float32, -bound1, bound1)
    w2 = jax.random.uniform(k3, (256, 10), jnp.float32, -bound2, bound2)
    b2 = jax.random.uniform(k4, (10,), jnp.float32, -bound2, bound2)
    return w1, b1, w2, b2


if __name__ == "__main__":
    key = jax.random.PRNGKey(0)
    kx, kp = jax.random.split(key)

    # Matches the reference script: x = torch.randn(10, 512)
    x = jax.random.normal(kx, (10, 512), dtype=jnp.float32)
    w1, b1, w2, b2 = init_params(kp)

    out = mlp_forward(x, w1, b1, w2, b2)
    out = jax.block_until_ready(out)

    # Correctness check against a pure-JAX f32 reference (tolerance accounts
    # for bf16 matmul operands with f32 accumulation).
    ref = jnp.maximum(x @ w1 + b1[None, :], 0.0) @ w2 + b2[None, :]
    assert out.shape == (10, 10), out.shape
    assert jnp.allclose(out, ref, atol=2e-2, rtol=2e-2), float(
        jnp.max(jnp.abs(out - ref)))

    print("KERNEL_OK")
</pallas_src>

<mosaic_0001>
module attributes {stable_mosaic.version = 11 : i64} {
  func.func @mlp_kernel(%arg0: memref<16x512xbf16, #tpu.memory_space<vmem>>, %arg1: memref<512x256xbf16, #tpu.memory_space<vmem>>, %arg2: memref<1x256xf32, #tpu.memory_space<vmem>>, %arg3: memref<256x128xbf16, #tpu.memory_space<vmem>>, %arg4: memref<1x128xf32, #tpu.memory_space<vmem>>, %arg5: memref<16x128xf32, #tpu.memory_space<vmem>>) attributes {dimension_semantics = [], scalar_prefetch = 0 : i64, scratch_operands = 0 : i64, tpu.core_type = #tpu.core_type<tc>} {
    %c0 = arith.constant 0 : index
    %c0_0 = arith.constant 0 : index
    %0 = vector.load %arg0[%c0, %c0_0] : memref<16x512xbf16, #tpu.memory_space<vmem>>, vector<16x512xbf16>
    %c0_1 = arith.constant 0 : index
    %c0_2 = arith.constant 0 : index
    %1 = vector.load %arg1[%c0_1, %c0_2] : memref<512x256xbf16, #tpu.memory_space<vmem>>, vector<512x256xbf16>
    %cst = arith.constant dense<0.000000e+00> : vector<16x256xf32>
    %2 = tpu.matmul %0, %1, %cst {dimension_numbers = #tpu.dot_dimension_numbers<[1], [0], [0], [1], [0, 0, 1, 1], [], []>} : vector<16x512xbf16>, vector<512x256xbf16>, vector<16x256xf32> -> vector<16x256xf32>
    %c0_3 = arith.constant 0 : index
    %c0_4 = arith.constant 0 : index
    %3 = vector.load %arg2[%c0_3, %c0_4] : memref<1x256xf32, #tpu.memory_space<vmem>>, vector<1x256xf32>
    %4 = vector.broadcast %3 : vector<1x256xf32> to vector<16x256xf32>
    %5 = arith.addf %2, %4 : vector<16x256xf32>
    %cst_5 = arith.constant 0.000000e+00 : f32
    %6 = vector.broadcast %cst_5 : f32 to vector<16x256xf32>
    %7 = arith.maximumf %5, %6 : vector<16x256xf32>
    %8 = arith.truncf %7 : vector<16x256xf32> to vector<16x256xbf16>
    %c0_6 = arith.constant 0 : index
    %c0_7 = arith.constant 0 : index
    %9 = vector.load %arg3[%c0_6, %c0_7] : memref<256x128xbf16, #tpu.memory_space<vmem>>, vector<256x128xbf16>
    %cst_8 = arith.constant dense<0.000000e+00> : vector<16x128xf32>
    %10 = tpu.matmul %8, %9, %cst_8 {dimension_numbers = #tpu.dot_dimension_numbers<[1], [0], [0], [1], [0, 0, 1, 1], [], []>} : vector<16x256xbf16>, vector<256x128xbf16>, vector<16x128xf32> -> vector<16x128xf32>
    %c0_9 = arith.constant 0 : index
    %c0_10 = arith.constant 0 : index
    %11 = vector.load %arg4[%c0_9, %c0_10] : memref<1x128xf32, #tpu.memory_space<vmem>>, vector<1x128xf32>
    %12 = vector.broadcast %11 : vector<1x128xf32> to vector<16x128xf32>
    %13 = arith.addf %10, %12 : vector<16x128xf32>
    %c0_11 = arith.constant 0 : index
    %c0_12 = arith.constant 0 : index
    %14 = vector.load %arg5[%c0_11, %c0_12] : memref<16x128xf32, #tpu.memory_space<vmem>>, vector<16x128xf32>
    tpu.vector_store %arg5[%c0_11, %c0_12], %13 {strides = array<i32>} : memref<16x128xf32, #tpu.memory_space<vmem>>, vector<16x128xf32>,
    return
  }
}

</mosaic_0001>

<bundles_post_ra>
// kernel: mlp_forward.1
= control target key start
LH: loop header
LB: loop body
LE: loop exit
PB: predicated region body
PF: predicated region fallthrough
CT: control target
= control target key end

     0   :  { %s1272_s0 = inlined_call_operand.vmem [shape: bf16[16,512], index: 0, kind: input, shape index: {}]   ;;  %s1273_s1 = inlined_call_operand.vmem [shape: bf16[512,256], index: 1, kind: input, shape index: {}]   ;;  %s1274_s2 = inlined_call_operand.vmem [shape: f32[1,256], index: 2, kind: input, shape index: {}]   ;;  %s1275_s3 = inlined_call_operand.vmem [shape: bf16[256,128], index: 3, kind: input, shape index: {}]   ;;  %s1276_s4 = inlined_call_operand.vmem [shape: f32[1,128], index: 4, kind: input, shape index: {}]   ;;  %s1277_s5 = inlined_call_operand.hbm [shape: f32[16,128], index: 5, kind: output, shape index: {}]  }
   0x1   :  { %v838_v0 = vld [vmem:[%s1273_s1 + $0x74] ss:$8 sps:$4 sm:$0xff]   ;;  %v842_v2 = vld [vmem:[%s1273_s1 + $0x70] ss:$8 sps:$4 sm:$0xff]   ;;  %v844_v4 = vld [vmem:[%s1273_s1 + $0x64] ss:$8 sps:$4 sm:$0xff]  }
   0x2   :  { %v840_v1 = vld [vmem:[%s1273_s1 + $0x174] ss:$8 sps:$4 sm:$0xff]   ;;  %442 = vmatprep.subr.bf16.mxu0 %v838_v0  ;;  %v843_v3 = vld [vmem:[%s1273_s1 + $0x170] ss:$8 sps:$4 sm:$0xff]   ;;  %v846_v5 = vld [vmem:[%s1273_s1 + $0x164] ss:$8 sps:$4 sm:$0xff]  }
   0x3   :  { %485 = vmatprep.subr.bf16.mxu1 %v840_v1  ;;  %443 = vmatpush1.bf16.msra.mxu0 %v842_v2  ;;  %v848_v6 = vld [vmem:[%s1273_s1 + $0x60] ss:$8 sps:$4 sm:$0xff]   ;;  %v850_v8 = vld [vmem:[%s1273_s1 + $0x54] ss:$8 sps:$4 sm:$0xff]   ;;  %v854_v10 = vld [vmem:[%s1273_s1 + $0x50] ss:$8 sps:$4 sm:$0xff]  }
   0x4   :  { %486 = vmatpush1.bf16.msra.mxu1 %v843_v3  ;;  %444 = vmatprep.subr.bf16.mxu0 %v844_v4  ;;  %v849_v7 = vld [vmem:[%s1273_s1 + $0x160] ss:$8 sps:$4 sm:$0xff]   ;;  %v852_v9 = vld [vmem:[%s1273_s1 + $0x154] ss:$8 sps:$4 sm:$0xff]   ;;  %v855_v11 = vld [vmem:[%s1273_s1 + $0x150] ss:$8 sps:$4 sm:$0xff]  }
   0x5   :  { %487 = vmatprep.subr.bf16.mxu1 %v846_v5  ;;  %v856_v12 = vld [vmem:[%s1273_s1 + $0x44] ss:$8 sps:$4 sm:$0xff]   ;;  %v860_v14 = vld [vmem:[%s1273_s1 + $0x40] ss:$8 sps:$4 sm:$0xff]   ;;  %v862_v16 = vld [vmem:[%s1273_s1 + $0x34] ss:$8 sps:$4 sm:$0xff]  }
   0x6   :  { %v858_v13 = vld [vmem:[%s1273_s1 + $0x144] ss:$8 sps:$4 sm:$0xff]   ;;  %v861_v15 = vld [vmem:[%s1273_s1 + $0x140] ss:$8 sps:$4 sm:$0xff]   ;;  %v864_v17 = vld [vmem:[%s1273_s1 + $0x134] ss:$8 sps:$4 sm:$0xff]  }
   0x7   :  { %445 = vmatpush1.bf16.msra.mxu0 %v848_v6  ;;  %v866_v18 = vld [vmem:[%s1273_s1 + $0x30] ss:$8 sps:$4 sm:$0xff]   ;;  %v868_v20 = vld [vmem:[%s1273_s1 + $0x24] ss:$8 sps:$4 sm:$0xff]   ;;  %v872_v22 = vld [vmem:[%s1273_s1 + $0x20] ss:$8 sps:$4 sm:$0xff]  }
   0x8   :  { %488 = vmatpush1.bf16.msra.mxu1 %v849_v7  ;;  %446 = vmatprep.subr.bf16.mxu0 %v850_v8  ;;  %v867_v19 = vld [vmem:[%s1273_s1 + $0x130] ss:$8 sps:$4 sm:$0xff]   ;;  %v870_v21 = vld [vmem:[%s1273_s1 + $0x124] ss:$8 sps:$4 sm:$0xff]   ;;  %v873_v23 = vld [vmem:[%s1273_s1 + $0x120] ss:$8 sps:$4 sm:$0xff]  }
   0x9   :  { %489 = vmatprep.subr.bf16.mxu1 %v852_v9  ;;  %v874_v24 = vld [vmem:[%s1273_s1 + $0x14] ss:$8 sps:$4 sm:$0xff]   ;;  %v878_v26 = vld [vmem:[%s1273_s1 + $0x10] ss:$8 sps:$4 sm:$0xff]   ;;  %v880_v28 = vld [vmem:[%s1273_s1 + $0x4] ss:$8 sps:$4 sm:$0xff]  }
   0xa   :  { %v876_v25 = vld [vmem:[%s1273_s1 + $0x114] ss:$8 sps:$4 sm:$0xff]   ;;  %v879_v27 = vld [vmem:[%s1273_s1 + $0x110] ss:$8 sps:$4 sm:$0xff]   ;;  %v882_v29 = vld [vmem:[%s1273_s1 + $0x104] ss:$8 sps:$4 sm:$0xff]  }
   0xb   :  { %447 = vmatpush1.bf16.msra.mxu0 %v854_v10  ;;  %v884_v30 = vld [vmem:[%s1273_s1] ss:$8 sps:$4 sm:$0xff]   ;;  %v886_v32 = vld [vmem:[%s1273_s1 + $0xf4] ss:$8 sps:$4 sm:$0xff]   ;;  %v890_v34 = vld [vmem:[%s1273_s1 + $0xf0] ss:$8 sps:$4 sm:$0xff]  }
   0xc   :  { %490 = vmatpush1.bf16.msra.mxu1 %v855_v11  ;;  %448 = vmatprep.subr.bf16.mxu0 %v856_v12  ;;  %v885_v31 = vld [vmem:[%s1273_s1 + $0x100] ss:$8 sps:$4 sm:$0xff]   ;;  %v888_v33 = vld [vmem:[%s1273_s1 + $0x1f4] ss:$8 sps:$4 sm:$0xff]   ;;  %v891_v35 = vld [vmem:[%s1273_s1 + $0x1f0] ss:$8 sps:$4 sm:$0xff]  }
   0xd   :  { %491 = vmatprep.subr.bf16.mxu1 %v858_v13  ;;  %v892_v36 = vld [vmem:[%s1273_s1 + $0xe4] ss:$8 sps:$4 sm:$0xff]   ;;  %v896_v38 = vld [vmem:[%s1273_s1 + $0xe0] ss:$8 sps:$4 sm:$0xff]   ;;  %v898_v40 = vld [vmem:[%s1273_s1 + $0xd4] ss:$8 sps:$4 sm:$0xff]  }
   0xe   :  { %v894_v37 = vld [vmem:[%s1273_s1 + $0x1e4] ss:$8 sps:$4 sm:$0xff]   ;;  %v897_v39 = vld [vmem:[%s1273_s1 + $0x1e0] ss:$8 sps:$4 sm:$0xff]   ;;  %v900_v41 = vld [vmem:[%s1273_s1 + $0x1d4] ss:$8 sps:$4 sm:$0xff]  }
   0xf   :  { %449 = vmatpush1.bf16.msra.mxu0 %v860_v14  ;;  %v902_v42 = vld [vmem:[%s1273_s1 + $0xd0] ss:$8 sps:$4 sm:$0xff]   ;;  %v904_v44 = vld [vmem:[%s1273_s1 + $0xc4] ss:$8 sps:$4 sm:$0xff]   ;;  %v908_v46 = vld [vmem:[%s1273_s1 + $0xc0] ss:$8 sps:$4 sm:$0xff]  }
  0x10   :  { %492 = vmatpush1.bf16.msra.mxu1 %v861_v15  ;;  %450 = vmatprep.subr.bf16.mxu0 %v862_v16  ;;  %v903_v43 = vld [vmem:[%s1273_s1 + $0x1d0] ss:$8 sps:$4 sm:$0xff]   ;;  %v906_v45 = vld [vmem:[%s1273_s1 + $0x1c4] ss:$8 sps:$4 sm:$0xff]   ;;  %v909_v47 = vld [vmem:[%s1273_s1 + $0x1c0] ss:$8 sps:$4 sm:$0xff]  }
  0x11   :  { %493 = vmatprep.subr.bf16.mxu1 %v864_v17  ;;  %v910_v48 = vld [vmem:[%s1273_s1 + $0xb4] ss:$8 sps:$4 sm:$0xff]   ;;  %v914_v52 = vld [vmem:[%s1273_s1 + $0xb0] ss:$8 sps:$4 sm:$0xff]   ;;  %v916_v54 = vld [vmem:[%s1273_s1 + $0xa4] ss:$8 sps:$4 sm:$0xff]  }
  0x12   :  { %v936_v49 = vld [vmem:[%s1272_s0 + $0x4] ss:$16 sps:$4 sm:$0xff]   ;;  %v939_v51 = vld [vmem:[%s1272_s0 + $0xc] ss:$16 sps:$4 sm:$0xff]   ;;  %v915_v53 = vld [vmem:[%s1273_s1 + $0x1b0] ss:$8 sps:$4 sm:$0xff]  }
  0x13   :  { %451 = vmatpush1.bf16.msra.mxu0 %v866_v18  ;;  %v912_v50 = vld [vmem:[%s1273_s1 + $0x1b4] ss:$8 sps:$4 sm:$0xff]   ;;  %474 = vmatprep.mubr.bf16.mxu0 %v936_v49  ;;  %v918_v55 = vld [vmem:[%s1273_s1 + $0x1a4] ss:$8 sps:$4 sm:$0xff]   ;;  %v920_v56 = vld [vmem:[%s1273_s1 + $0xa0] ss:$8 sps:$4 sm:$0xff]  }
  0x14   :  { %494 = vmatpush1.bf16.msra.mxu1 %v867_v19  ;;  %452 = vmatprep.subr.bf16.mxu0 %v868_v20  ;;  %v921_v57 = vld [vmem:[%s1273_s1 + $0x1a0] ss:$8 sps:$4 sm:$0xff]   ;;  %v922_v58 = vld [vmem:[%s1273_s1 + $0x94] ss:$8 sps:$4 sm:$0xff]   ;;  %v926_v60 = vld [vmem:[%s1273_s1 + $0x90] ss:$8 sps:$4 sm:$0xff]  }
  0x15   :  { %495 = vmatprep.subr.bf16.mxu1 %v870_v21  ;;  %517 = vmatprep.mubr.bf16.mxu1 %v939_v51  ;;  %v924_v59 = vld [vmem:[%s1273_s1 + $0x194] ss:$8 sps:$4 sm:$0xff]   ;;  %v927_v61 = vld [vmem:[%s1273_s1 + $0x190] ss:$8 sps:$4 sm:$0xff]   ;;  %v928_v62 = vld [vmem:[%s1273_s1 + $0x84] ss:$8 sps:$4 sm:$0xff]  }
  0x16   :  { %v930_v63 = vld [vmem:[%s1273_s1 + $0x184] ss:$8 sps:$4 sm:$0xff]  }
  0x17   :  { %453 = vmatpush1.bf16.msra.mxu0 %v872_v22 }
  0x18   :  { %496 = vmatpush1.bf16.msra.mxu1 %v873_v23  ;;  %454 = vmatprep.subr.bf16.mxu0 %v874_v24 }
  0x19   :  { %497 = vmatprep.subr.bf16.mxu1 %v876_v25 }
  0x1b   :  { %455 = vmatpush1.bf16.msra.mxu0 %v878_v26 }
  0x1c   :  { %498 = vmatpush1.bf16.msra.mxu1 %v879_v27  ;;  %456 = vmatprep.subr.bf16.mxu0 %v880_v28 }
  0x1d   :  { %499 = vmatprep.subr.bf16.mxu1 %v882_v29 }
  0x1f   :  { %457 = vmatpush1.bf16.msra.mxu0 %v884_v30 }
  0x20   :  { %500 = vmatpush1.bf16.msra.mxu1 %v885_v31  ;;  %458 = vmatprep.subr.bf16.mxu0 %v886_v32 }
  0x21   :  { %501 = vmatprep.subr.bf16.mxu1 %v888_v33 }
  0x23   :  { %459 = vmatpush2.bf16.msra.mxu0 %v890_v34 }
  0x24   :  { %502 = vmatpush2.bf16.msra.mxu1 %v891_v35  ;;  %460 = vmatprep.subr.bf16.mxu0 %v892_v36 }
  0x25   :  { %503 = vmatprep.subr.bf16.mxu1 %v894_v37 }
  0x27   :  { %461 = vmatpush2.bf16.msra.mxu0 %v896_v38 }
  0x28   :  { %504 = vmatpush2.bf16.msra.mxu1 %v897_v39  ;;  %462 = vmatprep.subr.bf16.mxu0 %v898_v40 }
  0x29   :  { %505 = vmatprep.subr.bf16.mxu1 %v900_v41 }
  0x2b   :  { %463 = vmatpush2.bf16.msra.mxu0 %v902_v42 }
  0x2c   :  { %506 = vmatpush2.bf16.msra.mxu1 %v903_v43  ;;  %464 = vmatprep.subr.bf16.mxu0 %v904_v44 }
  0x2d   :  { %507 = vmatprep.subr.bf16.mxu1 %v906_v45 }
  0x2f   :  { %465 = vmatpush2.bf16.msra.mxu0 %v908_v46 }
  0x30   :  { %508 = vmatpush2.bf16.msra.mxu1 %v909_v47  ;;  %466 = vmatprep.subr.bf16.mxu0 %v910_v48 }
  0x31   :  { %509 = vmatprep.subr.bf16.mxu1 %v912_v50 }
  0x33   :  { %467 = vmatpush2.bf16.msra.mxu0 %v914_v52 }
  0x34   :  { %510 = vmatpush2.bf16.msra.mxu1 %v915_v53  ;;  %468 = vmatprep.subr.bf16.mxu0 %v916_v54 }
  0x35   :  { %511 = vmatprep.subr.bf16.mxu1 %v918_v55 }
  0x37   :  { %469 = vmatpush2.bf16.msra.mxu0 %v920_v56 }
  0x38   :  { %512 = vmatpush2.bf16.msra.mxu1 %v921_v57  ;;  %470 = vmatprep.subr.bf16.mxu0 %v922_v58 }
  0x39   :  { %513 = vmatprep.subr.bf16.mxu1 %v924_v59 }
  0x3a   :  { %10 = vsyncpa [#allocation3], 0  ;;  %v932_v0 = vld [vmem:[%s1273_s1 + $0x80] ss:$8 sps:$4 sm:$0xff]   ;;  %v940_v2 = vld [vmem:[%s1275_s3 + $0x78] sm:$0xff]   ;;  %v92_v20 = vlaneseq  ;;  %s978_s10 = smov [#allocation2]  }
  0x3b   :  { %471 = vmatpush2.bf16.msra.mxu0 %v926_v60  ;;  %v933_v1 = vld [vmem:[%s1273_s1 + $0x180] ss:$8 sps:$4 sm:$0xff]   ;;  %v941_v5 = vld [vmem:[%s1275_s3 + $0x38] sm:$0xff]   ;;  %v942_v6 = vld [vmem:[%s1275_s3 + $0x70] sm:$0xff]  }
  0x3c   :  { %514 = vmatpush2.bf16.msra.mxu1 %v927_v61  ;;  %472 = vmatprep.subr.bf16.mxu0 %v928_v62  ;;  %v934_v3 = vld [vmem:[%s1272_s0] ss:$16 sps:$4 sm:$0xff]   ;;  %v937_v4 = vld [vmem:[%s1272_s0 + $0x8] ss:$16 sps:$4 sm:$0xff]   ;;  %v93_v21 = vshrl.u32 %v92_v20, 7  ;;  %s717_s0 = sshll.u32 %s978_s10, 4  ;;  %s718_s0 = int_to_ptr.vmem [resolvable:$true] %s717_s0 }
  0x3d   :  { %515 = vmatprep.subr.bf16.mxu1 %v930_v63  ;;  %v943_v7 = vld [vmem:[%s1275_s3 + $0x30] sm:$0xff]   ;;  %v944_v8 = vld [vmem:[%s1275_s3 + $0x68] sm:$0xff]   ;;  %v946_v10 = vld [vmem:[%s1275_s3 + $0x60] sm:$0xff]   ;;  %s956_s11 = scalar_lea.vmem %s718_s0, 256  ;;  %p961_p1 = scmp.lt.s32.totalorder %s718_s0, %s718_s0 }
  0x3e   :  { %v945_v9 = vld [vmem:[%s1275_s3 + $0x28] sm:$0xff]   ;;  %v947_v11 = vld [vmem:[%s1275_s3 + $0x20] sm:$0xff]   ;;  %v948_v12 = vld [vmem:[%s1275_s3 + $0x58] sm:$0xff]   ;;  %v98_v22 = vsub.s32 1, %v93_v21  ;;  %v94_v23 = vsub.s32 0, %v93_v21  ;;  %p957_p0 = scmp.ne.s32.totalorder %s718_s0, %s956_s11  ;;  %p962_p2 = scmp.lt.s32.totalorder %s956_s11, %s956_s11 }
  0x3f   :  { %473 = vmatpush2.bf16.msra.mxu0 %v932_v0  ;;  %v949_v13 = vld [vmem:[%s1275_s3 + $0x18] sm:$0xff]   ;;  %v950_v14 = vld [vmem:[%s1275_s3 + $0x50] sm:$0xff]   ;;  %v952_v16 = vld [vmem:[%s1275_s3 + $0x48] sm:$0xff]  }
  0x40   :  { %516 = vmatpush2.bf16.msra.mxu1 %v933_v1  ;;  %813 = vmatprep.subr.bf16.mxu0 %v940_v2  ;;  %v951_v15 = vld [vmem:[%s1275_s3 + $0x10] sm:$0xff]   ;;  %v953_v17 = vld [vmem:[%s1275_s3 + $0x8] sm:$0xff]   ;;  %v954_v18 = vld [vmem:[%s1275_s3 + $0x40] sm:$0xff]   ;;  %p963_p3 = por %p962_p2, %p961_p1 }
  0x41   :  { %v955_v19 = vld [vmem:[%s1275_s3] sm:$0xff]  }
  0x42   :  { %475 = vmatmul.mubr.bf16.vlgmr.msra.gmra.mxu0 %v934_v3  ;;  %v90_v24 = vld [vmem:[%s1274_s2] sm:$0x3]  ;;  %p964_p4 = pnand %p963_p3, %p957_p0 }
  0x43   :  { %518 = vmatmul.mubr.bf16.vlgmr.msra.gmra.mxu1 %v937_v4  ;;  %814 = vmatpush3.bf16.msra.mxu0 %v941_v5  ;;  %v99_v25 = vrot.slane %v90_v24, %v98_v22  ;;  %v95_v26 = vrot.slane %v90_v24, %v94_v23  ;;  %v796_v50 = vld [vmem:[%s1276_s4] ss:$0 sm:$0xff] }
  0x44   :  { %815 = vmatprep.subr.bf16.mxu0 %v942_v6 }
  0x47   :  { %816 = vmatpush3.bf16.msra.mxu0 %v943_v7 }
  0x48   :  { %817 = vmatprep.subr.bf16.mxu0 %v944_v8 }
  0x4b   :  { %818 = vmatpush3.bf16.msra.mxu0 %v945_v9 }
  0x4c   :  { %819 = vmatprep.subr.bf16.mxu0 %v946_v10 }
  0x4f   :  { %820 = vmatpush3.bf16.msra.mxu0 %v947_v11 }
  0x50   :  { %821 = vmatprep.subr.bf16.mxu0 %v948_v12 }
  0x53   :  { %822 = vmatpush3.bf16.msra.mxu0 %v949_v13 }
  0x54   :  { %823 = vmatprep.subr.bf16.mxu0 %v950_v14 }
  0x57   :  { %824 = vmatpush3.bf16.msra.mxu0 %v951_v15 }
  0x58   :  { %825 = vmatprep.subr.bf16.mxu0 %v952_v16 }
  0x5b   :  { %826 = vmatpush3.bf16.msra.mxu0 %v953_v17 }
  0x5c   :  { %827 = vmatprep.subr.bf16.mxu0 %v954_v18 }
  0x5f   :  { %828 = vmatpush3.bf16.msra.mxu0 %v955_v19 }
 0x102   :  { %v476_v27 = vpop.f32.mrf.mxu0 }
 0x103   :  { %v519_v28 = vpop.f32.mrf.mxu1  ;;  %v477_v32 = vadd.f32 %v476_v27, %v95_v26 }
 0x104   :  { %v478_v29 = vpop.f32.mrf.mxu0 }
 0x105   :  { %v521_v30 = vpop.f32.mrf.mxu1  ;;  %v479_v31 = vadd.f32 %v478_v29, %v99_v25  ;;  %v520_v40 = vadd.f32 %v519_v28, %v477_v32 }
 0x106   :  { %v480_v33 = vpop.f32.mrf.mxu0 }
 0x107   :  { %v523_v34 = vpop.f32.mrf.mxu1  ;;  %v481_v35 = vadd.f32 %v480_v33, %v95_v26  ;;  %v522_v37 = vadd.f32 %v521_v30, %v479_v31  ;;  %v528_v46 = vmax.f32 %v520_v40, 0.0 }
 0x108   :  { %v482_v36 = vpop.f32.mrf.mxu0 }
 0x109   :  { %v524_v38 = vadd.f32 %v523_v34, %v481_v35  ;;  %v483_v39 = vadd.f32 %v482_v36, %v99_v25  ;;  %v525_v41 = vpop.f32.mrf.mxu1  ;;  %v529_v44 = vmax.f32 %v522_v37, 0.0 }
 0x10b   :  { %v526_v42 = vadd.f32 %v525_v41, %v483_v39  ;;  %v530_v43 = vmax.f32 %v524_v38, 0.0 }
 0x10d   :  { %v531_v45 = vmax.f32 %v526_v42, 0.0  ;;  %v532_v48 = vpack.c.bf16 %v530_v43, %v528_v46 }
 0x10f   :  { %v533_v47 = vpack.c.bf16 %v531_v45, %v529_v44 }
 0x111   :  { %701 = vmatprep.mubr.bf16.mxu0 %v533_v47 }
 0x112   :  { %702 = vmatmul.mubr.bf16.vlgmr.msra.gmra.mxu0 %v532_v48 }
 0x1d2   :  { %v829_v49 = vpop.f32.mrf.mxu0 }
 0x1d4   :  { %v830_v51 = vpop.f32.mrf.mxu0 }
 0x1d5   :  { %v831_v52 = vadd.f32 %v830_v51, %v829_v49 }
 0x1d6   :  { %v832_v53 = vpop.f32.mrf.mxu0 }
 0x1d7   :  { %v704_v54 = vadd.f32 %v831_v52, %v796_v50 }
 0x1d8   :  { %v833_v55 = vpop.f32.mrf.mxu0 }
 0x1d9   :  { %710 = vst [vmem:[#allocation2] sm:$0xff] %v704_v54  ;;  %v834_v56 = vadd.f32 %v833_v55, %v832_v53 }
 0x1db   :  { %v707_v57 = vadd.f32 %v834_v56, %v796_v50 }
 0x1dd   :  { %711 = vst [vmem:[#allocation2 + $0x8] sm:$0xff] %v707_v57 }
 0x1de   :  { %967 = shalt.err (!%p964_p4)
}
 0x1df   :  { %s979_s4 = smov 128   ;;  %s980_s12 = smov 8  }
 0x1e0   :  { %723 = dma.vmem_to_hbm [thread:$0]  %s718_s0, 256, %s1277_s5, [#allocation3], %s979_s4, %s979_s4, %s980_s12  }
 0x1e1   :  { %976 = dma.done.wait [#allocation3], 256  }
 0x1e2   :  { %977 = vsyncadd [#allocation3], 4294967040 }
 0x1e3   :  { %727 = vsyncpa [#allocation3], 1 }

</bundles_post_ra>
